<compile_context>
chip_gen: v7x
topology: tpu7x:2x2x1
jax: 0.10.0
libtpu: 0.0.40
codegen_flags: <defaults>
</compile_context>

<pallas_src>
import functools

import jax
import jax.numpy as jnp
from jax.experimental import pallas as pl
from jax.experimental.pallas import tpu as pltpu


def _cdiv(a, b):
    return (a + b - 1) // b


def _conv1x1_kernel(x_ref, w_ref, b_ref, o_ref):
    # x_ref: (1, K, tm)    pixel-unshuffled activations, spatial on the lane axis
    # w_ref: (Cout, K)     1x1 conv weight (VMEM-resident across the grid)
    # b_ref: (Cout, 1)     bias (f32)
    # o_ref: (1, Cout, tm) lane-dense output block
    acc = jnp.dot(w_ref[...], x_ref[0], preferred_element_type=jnp.float32)
    o_ref[0] = (acc + b_ref[...]).astype(o_ref.dtype)


def pixel_unshuffle(x, scale):
    """Exact PyTorch nn.PixelUnshuffle semantics (NCHW)."""
    n, c, h, w = x.shape
    ho, wo = h // scale, w // scale
    x = x.reshape(n, c, ho, scale, wo, scale)
    x = jnp.transpose(x, (0, 1, 3, 5, 2, 4))        # (N, C, s, s, Ho, Wo)
    return x.reshape(n, c * scale * scale, ho, wo)  # channel = c*s*s + i*s + j


def _choose_spatial_tile(p, k, cout, itemsize, n_batch,
                         vmem_budget=12 << 20, cap=8192):
    """Spatial (lane) tile: either the full spatial extent (always a legal block)
    or the largest 128-multiple that fits the VMEM budget (double-buffered)."""
    per_col = 2 * (k + cout) * itemsize            # double-buffered in + out columns
    tm_cap = max(128, min(cap, (vmem_budget // per_col) // 128 * 128))
    tm = p if p <= tm_cap else tm_cap
    # Megacore: keep the grid at >= 2 steps so both TensorCores get work.
    if n_batch * _cdiv(p, tm) < 2 and p >= 256:
        tm = _cdiv(_cdiv(p, 2), 128) * 128
    return tm


@functools.partial(jax.jit, static_argnames=("scale", "compute_dtype"))
def downsample_forward(x, weight, bias, scale, compute_dtype=None):
    """x: (N, C, H, W); weight: (Cout, C*s*s) = conv weight[..., 0, 0]; bias: (Cout,)."""
    n, c, h, w = x.shape
    assert h % scale == 0 and w % scale == 0, "H, W must be divisible by scale"
    ho, wo = h // scale, w // scale
    k = c * scale * scale
    cout = weight.shape[0]
    p = ho * wo
    out_dtype = x.dtype

    # Optional low-precision compute: cast *before* the unshuffle so the
    # transpose pass writes (and the kernel reads) the narrow dtype.
    if compute_dtype is not None:
        x = x.astype(compute_dtype)
        w_mat = weight.astype(compute_dtype)
    else:
        w_mat = weight

    # One transpose pass (the unavoidable pixel-unshuffle), then a *free* reshape
    # to channel-major (N, K, P).  No padding pass, no NHWC transpose pass.
    x_km = pixel_unshuffle(x, scale).reshape(n, k, p)
    b_mat = bias.reshape(cout, 1).astype(jnp.float32)

    itemsize = jnp.dtype(x_km.dtype).itemsize
    tm = _choose_spatial_tile(p, k, cout, itemsize, n)
    grid = (n, _cdiv(p, tm))

    cost = pl.CostEstimate(
        flops=2 * n * p * k * cout,
        transcendentals=0,
        bytes_accessed=(n * k * p * itemsize                      # activations
                        + k * cout * itemsize                     # weight
                        + cout * 4                                # bias
                        + n * cout * p * jnp.dtype(out_dtype).itemsize),
    )

    out = pl.pallas_call(
        _conv1x1_kernel,
        out_shape=jax.ShapeDtypeStruct((n, cout, p), out_dtype),
        grid=grid,
        in_specs=[
            pl.BlockSpec((1, k, tm), lambda b, i: (b, 0, i)),   # activations
            pl.BlockSpec((cout, k), lambda b, i: (0, 0)),       # weight (resident)
            pl.BlockSpec((cout, 1), lambda b, i: (0, 0)),       # bias (resident)
        ],
        out_specs=pl.BlockSpec((1, cout, tm), lambda b, i: (b, 0, i)),
        compiler_params=pltpu.CompilerParams(
            dimension_semantics=("parallel", "parallel")),
        cost_estimate=cost,
    )(x_km, w_mat, b_mat)

    return out.reshape(n, cout, ho, wo)   # free reshape; result already channel-major


def init_params(key, in_channels, scale):
    """Deterministic synthetic init matching Conv2d(in_channels*s*s -> in_channels, k=1)."""
    k_in = in_channels * scale * scale
    kw, kb = jax.random.split(key)
    fan_in = k_in  # kernel_size = 1
    bound = 1.0 / (fan_in ** 0.5)
    weight = jax.random.uniform(kw, (in_channels, k_in), jnp.float32, -bound, bound)
    bias = jax.random.uniform(kb, (in_channels,), jnp.float32, -bound, bound)
    return weight, bias


if __name__ == "__main__":
    key = jax.random.PRNGKey(0)
    kx, kp = jax.random.split(key)

    def reference(x, weight, bias, scale):
        xu = pixel_unshuffle(x, scale)
        return jnp.einsum("nkhw,ck->nchw", xu, weight) + bias[None, :, None, None]

    # Case 1: the module's nominal small config (batch=2, C=4, 16x16, scale=2).
    batch, in_channels, hw, scale = 2, 4, 16, 2
    x = jax.random.normal(kx, (batch, in_channels, hw, hw), jnp.float32)
    weight, bias = init_params(kp, in_channels, scale)
    out = jax.block_until_ready(downsample_forward(x, weight, bias, scale))
    ref = reference(x, weight, bias, scale)
    assert out.shape == (batch, in_channels, hw // scale, hw // scale)
    assert jnp.allclose(out, ref, atol=1e-5, rtol=1e-5)

    # Case 2: optional bf16 compute path (halves HBM traffic); f32 accumulation.
    out_bf16 = jax.block_until_ready(
        downsample_forward(x, weight, bias, scale, compute_dtype=jnp.bfloat16))
    assert jnp.allclose(out_bf16, ref, atol=1e-1, rtol=5e-2)

    # Case 3: single batch, larger image -> exercises spatial multi-block tiling
    # (tm = 512 lanes, grid = (1, 2)) and the megacore >=2-step heuristic.
    x3 = jax.random.normal(kx, (1, in_channels, 64, 64), jnp.float32)
    out3 = jax.block_until_ready(downsample_forward(x3, weight, bias, scale))
    assert jnp.allclose(out3, reference(x3, weight, bias, scale),
                        atol=1e-4, rtol=1e-4)

    # Case 4: scale = 4 (K = 64), full-extent blocks for a tiny spatial grid.
    w4, b4 = init_params(kp, in_channels, 4)
    out4 = jax.block_until_ready(downsample_forward(x, w4, b4, 4))
    assert jnp.allclose(out4, reference(x, w4, b4, 4), atol=1e-4, rtol=1e-4)

    print("KERNEL_OK")
</pallas_src>

<mosaic_0001>
module attributes {stable_mosaic.version = 11 : i64} {
  func.func @_conv1x1_kernel(%arg0: i32, %arg1: i32, %arg2: memref<1x16x64xf32, #tpu.memory_space<vmem>>, %arg3: memref<4x16xf32, #tpu.memory_space<vmem>>, %arg4: memref<4x1xf32, #tpu.memory_space<vmem>>, %arg5: memref<1x4x64xf32, #tpu.memory_space<vmem>>) attributes {dimension_semantics = [#tpu.dimension_semantics<parallel>, #tpu.dimension_semantics<parallel>], iteration_bounds = array<i64: 2, 1>, scalar_prefetch = 0 : i64, scratch_operands = 0 : i64, tpu.core_type = #tpu.core_type<tc>, window_params = [{transform_indices = @transform_0, window_bounds = array<i64: 1, 16, 64>}, {pipeline_mode = #tpu.pipeline_mode<synchronous>, transform_indices = @transform_1, window_bounds = array<i64: 4, 16>}, {pipeline_mode = #tpu.pipeline_mode<synchronous>, transform_indices = @transform_2, window_bounds = array<i64: 4, 1>}, {transform_indices = @transform_3, window_bounds = array<i64: 1, 4, 64>}]} {
    %c0 = arith.constant 0 : index
    %c0_0 = arith.constant 0 : index
    %0 = vector.load %arg3[%c0, %c0_0] : memref<4x16xf32, #tpu.memory_space<vmem>>, vector<4x16xf32>
    %c0_1 = arith.constant 0 : index
    %c0_2 = arith.constant 0 : index
    %c0_3 = arith.constant 0 : index
    %1 = vector.load %arg2[%c0_1, %c0_2, %c0_3] : memref<1x16x64xf32, #tpu.memory_space<vmem>>, vector<1x16x64xf32>
    %2 = vector.shape_cast %1 : vector<1x16x64xf32> to vector<16x64xf32>
    %cst = arith.constant dense<0.000000e+00> : vector<4x64xf32>
    %3 = tpu.matmul %0, %2, %cst {dimension_numbers = #tpu.dot_dimension_numbers<[1], [0], [0], [1], [0, 0, 1, 1], [], []>} : vector<4x16xf32>, vector<16x64xf32>, vector<4x64xf32> -> vector<4x64xf32>
    %c0_4 = arith.constant 0 : index
    %c0_5 = arith.constant 0 : index
    %4 = vector.load %arg4[%c0_4, %c0_5] : memref<4x1xf32, #tpu.memory_space<vmem>>, vector<4x1xf32>
    %5 = vector.broadcast %4 : vector<4x1xf32> to vector<4x64xf32>
    %6 = arith.addf %3, %5 : vector<4x64xf32>
    %c0_6 = arith.constant 0 : index
    %c0_7 = arith.constant 0 : index
    %c0_8 = arith.constant 0 : index
    %7 = vector.load %arg5[%c0_6, %c0_7, %c0_8] : memref<1x4x64xf32, #tpu.memory_space<vmem>>, vector<1x4x64xf32>
    %8 = vector.shape_cast %7 : vector<1x4x64xf32> to vector<4x64xf32>
    %9 = vector.shape_cast %6 : vector<4x64xf32> to vector<1x4x64xf32>
    tpu.vector_store %arg5[%c0_6, %c0_7, %c0_8], %9 {strides = array<i32>} : memref<1x4x64xf32, #tpu.memory_space<vmem>>, vector<1x4x64xf32>,
    return
  }
  func.func @transform_0(%arg0: i32, %arg1: i32) -> (i32, i32, i32) {
    %c0_i32 = arith.constant 0 : i32
    %c0_i32_0 = arith.constant 0 : i32
    return %arg0, %c0_i32, %arg1 : i32, i32, i32
  }
  func.func @transform_1(%arg0: i32, %arg1: i32) -> (i32, i32) {
    %c0_i32 = arith.constant 0 : i32
    %c0_i32_0 = arith.constant 0 : i32
    %c0_i32_1 = arith.constant 0 : i32
    return %c0_i32, %c0_i32_0 : i32, i32
  }
  func.func @transform_2(%arg0: i32, %arg1: i32) -> (i32, i32) {
    %c0_i32 = arith.constant 0 : i32
    %c0_i32_0 = arith.constant 0 : i32
    %c0_i32_1 = arith.constant 0 : i32
    return %c0_i32, %c0_i32_0 : i32, i32
  }
  func.func @transform_3(%arg0: i32, %arg1: i32) -> (i32, i32, i32) {
    %c0_i32 = arith.constant 0 : i32
    %c0_i32_0 = arith.constant 0 : i32
    return %arg0, %c0_i32, %arg1 : i32, i32, i32
  }
}

</mosaic_0001>

<bundles_post_ra>
// kernel: downsample_forward.1
= control target key start
LH: loop header
LB: loop body
LE: loop exit
PB: predicated region body
PF: predicated region fallthrough
CT: control target
= control target key end

     0   :  { %s464_s12 = smov 0   ;;  %s466_s13 = smov 0   ;;  %s503_s0 = inlined_call_operand.vmem [shape: f32[2,16,64], index: 0, kind: input, shape index: {}]   ;;  %s504_s1 = inlined_call_operand.vmem [shape: f32[4,16], index: 1, kind: input, shape index: {}]   ;;  %s505_s2 = inlined_call_operand.vmem [shape: f32[4,1], index: 2, kind: input, shape index: {}]   ;;  %s506_s3 = inlined_call_operand.vmem [shape: f32[2,4,64], index: 3, kind: output, shape index: {}]  }
   0x1   :  { %s468_s14 = smov 0  }
   0x2 LB: > { %s25_s15 = sadd.s32 1, %s434_s13  ;;  %p366_p0 = scmp.ge.s32.totalorder %s438_s14, 1  ;;  %s438_s14 = sphi %s468_s14, %s13_s14   ;;  %s434_s13 = sphi %s466_s13, %s508_s13   ;;  %s430_s12 = sphi %s464_s12, %s507_s12  }
   0x3   : > { %p27_p1 = scmp.ge.s32.totalorder %s25_s15, 2  ;;  %p156_p2 = scmp.lt.s32.totalorder %s438_s14, 3 }
   0x5   : > { %s510_s15 = smov (%p27_p1, %s25_s15), 0  ;;  %p157_p3 = pnand %p366_p0, %p156_p2 }
   0x6   : > { %p185_p4 = scmp.lt.s32.totalorder (!%p157_p3), %s430_s12, 1  ;;  %v440_v0 = vmov (!%p157_p3), 0.0|0.0   ;;  %vm441_vm0 = vmmov (!%p157_p3), 0   ;;  %v442_v1 = vmov (!%p157_p3), 0.0   ;;  %v203_v2 = vld [vmem:[%s505_s2] sm:$0xf] (!%p157_p3) }
   0x7   : > { %160 = sbr.rel (%p157_p3) target bundleno = 238 (0xee), region = 32  ;;  %384 = vmatprep.subr.bf16.mxu0 (!%p157_p3), %v440_v0  ;;  %381 = vmatprep.mubr.msk.f32.mxu0 (!%p157_p3), %vm441_vm0, %v442_v1  ;;  %v443_v3 = vmov (!%p157_p3), 0   ;;  %v200_v7 = vld [vmem:[%s504_s1] sm:$0xf] (!%p157_p3)  ;;  %vm209_vm1 = vcmask (!%p157_p3), 130048   ;;  %vm283_vm2 = vcmask (!%p157_p3), 519168  }
   0x8   : > { %415 = vset.pattern.permute.xlu0 (!%p157_p3), %v443_v3 }
   0x9   : > { %206 = vperm.xlu0 (!%p157_p3), %415, %v203_v2  }
   0xe   : > { %s512_s12 = smov (!%p185_p4, %s430_s12), 1 }
   0xf   : > { %s373_s18 = sshll.u32 %s512_s12, 4  ;;  %s369_s24 = sshll.u32 %s512_s12, 2 }
  0x10   : > { %s192_s21 = scalar_lea.vmem %s503_s0, %s373_s18  ;;  %s199_s27 = scalar_lea.vmem %s506_s3, %s369_s24 }
  0x11   : > { %v201_v4 = vld [vmem:[%s192_s21] sm:$0xff]  ;;  %v202_v5 = vld [vmem:[%s192_s21 + $0x8] sm:$0xff] }
  0x12   : > { %v385_v6 = vpack.c.bf16 %v202_v5, %v201_v4 }
  0x14   : > { %386 = vmatpush3.bf16.msra.mxu0 %v385_v6 }
  0x17   : > { %382 = vmatmul.mubr.msk.f32.vlgmr.msra.gmra.mrb[0].mxu0 %vm209_vm1, %v200_v7 }
  0x88   : > { %v207_v8 = vpop.permute.xlu0 %206 }
  0xea   : > { %v279_v9 = vpop.f32.mrb[0].mxu0 }
  0xeb   : > { %v280_v10 = vadd.f32 %v279_v9, %v207_v8  ;;  %v383_v11 = vpop.f32.mrb[1].mxu0 }
  0xed   : > { %284 = vst.msk [vmem:[%s199_s27] sm:$0xf] %vm283_vm2, %v280_v10 }
  0xee PF: > { %s13_s14 = sadd.s32 1, %s438_s14   ;;  %s507_s12 = smov %s434_s13 }
  0xef   : > { %p10_p5 = scmp.ge.s32.totalorder %s13_s14, 4   ;;  %s508_s13 = smov %s510_s15 }
  0xf1   :  { %12 = sbr.rel (!%p10_p5) target bundleno = 2 (0x2), region = 62 }

</bundles_post_ra>
